<compile_context>
chip_gen: v7x
topology: tpu7x:2x2x1
jax: 0.10.0
libtpu: 0.0.40
codegen_flags: <defaults>
</compile_context>

<pallas_src>
import jax
import jax.numpy as jnp
from jax import lax
from jax.experimental import pallas as pl
from jax.experimental.pallas import tpu as pltpu


LN_EPS = 1e-5   # PyTorch nn.LayerNorm default
LANE = 128
SUBLANE = 8


def _round_up(n, m):
    return ((n + m - 1) // m) * m


def _layernorm(h, gamma, beta):
    mean = jnp.mean(h, axis=-1, keepdims=True)
    centered = h - mean
    var = jnp.mean(centered * centered, axis=-1, keepdims=True)
    return centered * lax.rsqrt(var + LN_EPS) * gamma + beta


def ddpg_actor_kernel(ab_ref, x_ref, w1_ref, w2_ref, w3_ref, b3_ref, ln_ref, o_ref):
    action_bound = ab_ref[0, 0]            # SMEM scalar
    cdt = w1_ref.dtype                     # matmul compute dtype (bf16 by default)
    x = x_ref[...].astype(cdt)

    # Packed parameter slab (f32): rows 0..5 = b1, g1, be1, b2, g2, be2 (rows 6,7 pad).
    b1 = ln_ref[0:1, :]
    g1 = ln_ref[1:2, :]
    be1 = ln_ref[2:3, :]
    b2 = ln_ref[3:4, :]
    g2 = ln_ref[4:5, :]
    be2 = ln_ref[5:6, :]

    # l1 -> LayerNorm -> ReLU   (bf16 MXU inputs, f32 accumulation + f32 elementwise)
    h1 = jnp.dot(x, w1_ref[...], preferred_element_type=jnp.float32) + b1
    h1 = jnp.maximum(_layernorm(h1, g1, be1), 0.0)

    # l2 -> LayerNorm -> ReLU
    h2 = jnp.dot(h1.astype(cdt), w2_ref[...], preferred_element_type=jnp.float32) + b2
    h2 = jnp.maximum(_layernorm(h2, g2, be2), 0.0)

    # l3 -> tanh -> scale by action_bound (padded lanes are exactly 0: w3/b3 pad = 0)
    h3 = jnp.dot(h2.astype(cdt), w3_ref[...], preferred_element_type=jnp.float32) + b3_ref[...]
    o_ref[...] = jnp.tanh(h3) * action_bound


def prepare_params(params, *, weight_dtype=jnp.bfloat16):
    """One-time parameter packing (do NOT call per forward):
       - pad w3/b3 columns to a multiple of 128 lanes (zeros -> exact results),
       - pack the six [1,H] LayerNorm/bias vectors into one (8,H) f32 slab,
       - cast weight matrices to the MXU compute dtype (bf16 by default)."""
    H = params["w1"].shape[1]
    action_dim = params["w3"].shape[1]
    A_pad = _round_up(action_dim, LANE)

    w3 = jnp.pad(params["w3"], ((0, 0), (0, A_pad - action_dim)))
    b3 = jnp.pad(params["b3"], ((0, 0), (0, A_pad - action_dim)))
    ln_slab = jnp.concatenate(
        [params["b1"], params["g1"], params["be1"],
         params["b2"], params["g2"], params["be2"],
         jnp.zeros((2, H), jnp.float32)],
        axis=0).astype(jnp.float32)

    return {
        "w1": params["w1"].astype(weight_dtype),
        "w2": params["w2"].astype(weight_dtype),
        "w3": w3.astype(weight_dtype),
        "b3": b3.astype(jnp.float32),
        "ln": ln_slab,
        "action_dim": action_dim,
    }


def ddpg_actor_forward(x, prep, action_bound, *, batch_tile=512):
    """Runs the fused actor MLP with a batch grid, single-buffered resident
    weights, and a lane-dense (padded-to-128) output sliced back in the wrapper."""
    B, state_dim = x.shape
    H = prep["w1"].shape[1]
    A_pad = prep["w3"].shape[1]
    action_dim = prep["action_dim"]
    wbytes = jnp.dtype(prep["w1"].dtype).itemsize

    # Batch tiling: TB is a multiple of 8; pad batch rows (sliced off below).
    TB = _round_up(min(batch_tile, _round_up(B, SUBLANE)), SUBLANE)
    B_pad = _round_up(B, TB)
    if B_pad != B:
        x = jnp.pad(x, ((0, B_pad - B), (0, 0)))

    ab = jnp.full((1, 1), action_bound, jnp.float32)

    # Explicit VMEM budget: 1x resident params (Buffered(1)) + 2x streamed
    # x/out tiles + f32 intermediates, with 2x headroom. Clamp to [32, 64] MiB
    # so v5e's 16 MiB default scoped limit is raised and v7x's 64 MiB physical
    # VMEM is never exceeded.
    resident = (state_dim * H + H * H + H * A_pad) * wbytes + (A_pad + SUBLANE * H) * 4
    streamed = 2 * TB * state_dim * x.dtype.itemsize + 2 * TB * A_pad * 4
    interm = 4 * TB * H * 4
    vmem_limit = int(min(max(2 * (resident + streamed + interm), 32 << 20), 64 << 20))

    def resident_spec(shape):
        # Constant block across the grid -> single-buffer it (halves its VMEM).
        return pl.BlockSpec(shape, lambda i: (0, 0), pipeline_mode=pl.Buffered(1))

    out = pl.pallas_call(
        ddpg_actor_kernel,
        out_shape=jax.ShapeDtypeStruct((B_pad, A_pad), jnp.float32),
        grid=(B_pad // TB,),
        in_specs=[
            pl.BlockSpec(memory_space=pltpu.MemorySpace.SMEM),   # action_bound (1,1)
            pl.BlockSpec((TB, state_dim), lambda i: (i, 0)),     # x tile (double-buffered)
            resident_spec((state_dim, H)),                       # w1 (resident, 1-buf)
            resident_spec((H, H)),                               # w2 (resident, 1-buf)
            resident_spec((H, A_pad)),                           # w3 padded (resident)
            resident_spec((1, A_pad)),                           # b3 padded
            resident_spec((SUBLANE, H)),                         # packed LN/bias slab
        ],
        out_specs=pl.BlockSpec((TB, A_pad), lambda i: (i, 0)),
        compiler_params=pltpu.CompilerParams(
            # On v7x, pltpu.CORE_PARALLEL here shards the batch grid across
            # both TensorCores (each TC keeps its own resident weight copy).
            dimension_semantics=("parallel",),
            vmem_limit_bytes=vmem_limit),
    )(ab, x, prep["w1"], prep["w2"], prep["w3"], prep["b3"], prep["ln"])

    return out[:B, :action_dim]


def init_params(key, state_dim, hidden_size, action_dim, init_w=0.003):
    """Deterministic init mirroring the PyTorch module's shapes.
    fanin_init -> U(-1/sqrt(fan_in), 1/sqrt(fan_in)); l3 weight -> U(-init_w, init_w);
    biases keep nn.Linear's default U(-1/sqrt(fan_in), 1/sqrt(fan_in)).
    Weights are stored transposed ([in, out]) relative to PyTorch's [out, in]."""
    ks = jax.random.split(key, 6)
    v1 = 1.0 / jnp.sqrt(jnp.float32(state_dim))
    v2 = 1.0 / jnp.sqrt(jnp.float32(hidden_size))
    return {
        "w1": jax.random.uniform(ks[0], (state_dim, hidden_size), jnp.float32, -v1, v1),
        "b1": jax.random.uniform(ks[1], (1, hidden_size), jnp.float32, -v1, v1),
        "g1": jnp.ones((1, hidden_size), jnp.float32),
        "be1": jnp.zeros((1, hidden_size), jnp.float32),
        "w2": jax.random.uniform(ks[2], (hidden_size, hidden_size), jnp.float32, -v2, v2),
        "b2": jax.random.uniform(ks[3], (1, hidden_size), jnp.float32, -v2, v2),
        "g2": jnp.ones((1, hidden_size), jnp.float32),
        "be2": jnp.zeros((1, hidden_size), jnp.float32),
        "w3": jax.random.uniform(ks[4], (hidden_size, action_dim), jnp.float32, -init_w, init_w),
        "b3": jax.random.uniform(ks[5], (1, action_dim), jnp.float32, -v2, v2),
    }


def reference_forward(x, params, action_bound, compute_dtype=jnp.float32):
    """Pure-JAX reference. With compute_dtype=bfloat16 it mirrors the kernel's
    bf16-matmul-inputs / f32-accumulation / f32-elementwise recipe exactly."""
    def mm(a, w):
        return jnp.dot(a.astype(compute_dtype), w.astype(compute_dtype),
                       preferred_element_type=jnp.float32)
    h = mm(x, params["w1"]) + params["b1"]
    h = jnp.maximum(_layernorm(h, params["g1"], params["be1"]), 0.0)
    h = mm(h, params["w2"]) + params["b2"]
    h = jnp.maximum(_layernorm(h, params["g2"], params["be2"]), 0.0)
    h = mm(h, params["w3"]) + params["b3"]
    return jnp.tanh(h) * action_bound


if __name__ == "__main__":
    batch = 8
    state_dim = 16
    hidden_size = 32
    action_dim = 4
    action_bound = 2.0

    key = jax.random.PRNGKey(0)
    kx, kp = jax.random.split(key)
    x = jax.random.normal(kx, (batch, state_dim), jnp.float32)
    params = init_params(kp, state_dim, hidden_size, action_dim)

    # 1) f32 weights: strict check against the f32 reference.
    prep_f32 = prepare_params(params, weight_dtype=jnp.float32)
    out_f32 = jax.block_until_ready(ddpg_actor_forward(x, prep_f32, action_bound))
    ref_f32 = reference_forward(x, params, action_bound)
    assert out_f32.shape == (batch, action_dim)
    assert jnp.allclose(out_f32, ref_f32, atol=1e-5, rtol=1e-5), "f32 mismatch vs reference"

    # 2) bf16 weights (production default): check against the bf16-mirroring reference.
    prep_bf16 = prepare_params(params)  # weight_dtype=bfloat16
    out_bf16 = jax.block_until_ready(ddpg_actor_forward(x, prep_bf16, action_bound))
    ref_bf16 = reference_forward(x, params, action_bound, compute_dtype=jnp.bfloat16)
    assert out_bf16.shape == (batch, action_dim)
    assert jnp.allclose(out_bf16, ref_bf16, atol=1e-3, rtol=1e-3), "bf16 mismatch vs reference"

    print("KERNEL_OK")
</pallas_src>

<mosaic_0001>
module attributes {stable_mosaic.version = 11 : i64} {
  func.func @ddpg_actor_kernel(%arg0: i32, %arg1: memref<1x1xf32, #tpu.memory_space<smem>>, %arg2: memref<8x16xf32, #tpu.memory_space<vmem>>, %arg3: memref<16x32xf32, #tpu.memory_space<vmem>>, %arg4: memref<32x32xf32, #tpu.memory_space<vmem>>, %arg5: memref<32x128xf32, #tpu.memory_space<vmem>>, %arg6: memref<1x128xf32, #tpu.memory_space<vmem>>, %arg7: memref<8x32xf32, #tpu.memory_space<vmem>>, %arg8: memref<8x128xf32, #tpu.memory_space<vmem>>) attributes {dimension_semantics = [#tpu.dimension_semantics<parallel>], iteration_bounds = array<i64: 1>, scalar_prefetch = 0 : i64, scratch_operands = 0 : i64, tpu.core_type = #tpu.core_type<tc>, window_params = [{transform_indices = @transform_0, window_bounds = array<i64: 1, 1>}, {transform_indices = @transform_1, window_bounds = array<i64: 8, 16>}, {pipeline_mode = #tpu.pipeline_mode<synchronous>, transform_indices = @transform_2, window_bounds = array<i64: 16, 32>}, {pipeline_mode = #tpu.pipeline_mode<synchronous>, transform_indices = @transform_3, window_bounds = array<i64: 32, 32>}, {pipeline_mode = #tpu.pipeline_mode<synchronous>, transform_indices = @transform_4, window_bounds = array<i64: 32, 128>}, {pipeline_mode = #tpu.pipeline_mode<synchronous>, transform_indices = @transform_5, window_bounds = array<i64: 1, 128>}, {pipeline_mode = #tpu.pipeline_mode<synchronous>, transform_indices = @transform_6, window_bounds = array<i64: 8, 32>}, {transform_indices = @transform_7, window_bounds = array<i64: 8, 128>}]} {
    %c0 = arith.constant 0 : index
    %c0_0 = arith.constant 0 : index
    %0 = memref.load %arg1[%c0, %c0_0] : memref<1x1xf32, #tpu.memory_space<smem>>
    %c0_1 = arith.constant 0 : index
    %c0_2 = arith.constant 0 : index
    %1 = vector.load %arg2[%c0_1, %c0_2] : memref<8x16xf32, #tpu.memory_space<vmem>>, vector<8x16xf32>
    %c0_3 = arith.constant 0 : index
    %c0_4 = arith.constant 0 : index
    %2 = vector.load %arg7[%c0_3, %c0_4] : memref<8x32xf32, #tpu.memory_space<vmem>>, vector<1x32xf32>
    %c1 = arith.constant 1 : index
    %c0_5 = arith.constant 0 : index
    %3 = vector.load %arg7[%c1, %c0_5] : memref<8x32xf32, #tpu.memory_space<vmem>>, vector<1x32xf32>
    %c2 = arith.constant 2 : index
    %c0_6 = arith.constant 0 : index
    %4 = vector.load %arg7[%c2, %c0_6] : memref<8x32xf32, #tpu.memory_space<vmem>>, vector<1x32xf32>
    %c3 = arith.constant 3 : index
    %c0_7 = arith.constant 0 : index
    %5 = vector.load %arg7[%c3, %c0_7] : memref<8x32xf32, #tpu.memory_space<vmem>>, vector<1x32xf32>
    %c4 = arith.constant 4 : index
    %c0_8 = arith.constant 0 : index
    %6 = vector.load %arg7[%c4, %c0_8] : memref<8x32xf32, #tpu.memory_space<vmem>>, vector<1x32xf32>
    %c5 = arith.constant 5 : index
    %c0_9 = arith.constant 0 : index
    %7 = vector.load %arg7[%c5, %c0_9] : memref<8x32xf32, #tpu.memory_space<vmem>>, vector<1x32xf32>
    %c0_10 = arith.constant 0 : index
    %c0_11 = arith.constant 0 : index
    %8 = vector.load %arg3[%c0_10, %c0_11] : memref<16x32xf32, #tpu.memory_space<vmem>>, vector<16x32xf32>
    %cst = arith.constant dense<0.000000e+00> : vector<8x32xf32>
    %9 = tpu.matmul %1, %8, %cst {dimension_numbers = #tpu.dot_dimension_numbers<[1], [0], [0], [1], [0, 0, 1, 1], [], []>} : vector<8x16xf32>, vector<16x32xf32>, vector<8x32xf32> -> vector<8x32xf32>
    %10 = vector.broadcast %2 : vector<1x32xf32> to vector<8x32xf32>
    %11 = arith.addf %9, %10 : vector<8x32xf32>
    %cst_12 = arith.constant dense<0.000000e+00> : vector<8xf32>
    %12 = vector.multi_reduction <add>, %11, %cst_12 [1] : vector<8x32xf32> to vector<8xf32>
    %13 = vector.shape_cast %12 : vector<8xf32> to vector<8x1xf32>
    %cst_13 = arith.constant 3.200000e+01 : f32
    %14 = vector.broadcast %cst_13 : f32 to vector<8x1xf32>
    %15 = arith.divf %13, %14 : vector<8x1xf32>
    %16 = vector.broadcast %15 : vector<8x1xf32> to vector<8x32xf32>
    %17 = arith.subf %11, %16 : vector<8x32xf32>
    %18 = arith.mulf %17, %17 : vector<8x32xf32>
    %cst_14 = arith.constant dense<0.000000e+00> : vector<8xf32>
    %19 = vector.multi_reduction <add>, %18, %cst_14 [1] : vector<8x32xf32> to vector<8xf32>
    %20 = vector.shape_cast %19 : vector<8xf32> to vector<8x1xf32>
    %cst_15 = arith.constant 3.200000e+01 : f32
    %21 = vector.broadcast %cst_15 : f32 to vector<8x1xf32>
    %22 = arith.divf %20, %21 : vector<8x1xf32>
    %cst_16 = arith.constant 9.99999974E-6 : f32
    %23 = vector.broadcast %cst_16 : f32 to vector<8x1xf32>
    %24 = arith.addf %22, %23 : vector<8x1xf32>
    %25 = math.rsqrt %24 : vector<8x1xf32>
    %26 = vector.broadcast %25 : vector<8x1xf32> to vector<8x32xf32>
    %27 = arith.mulf %17, %26 : vector<8x32xf32>
    %28 = vector.broadcast %3 : vector<1x32xf32> to vector<8x32xf32>
    %29 = arith.mulf %27, %28 : vector<8x32xf32>
    %30 = vector.broadcast %4 : vector<1x32xf32> to vector<8x32xf32>
    %31 = arith.addf %29, %30 : vector<8x32xf32>
    %cst_17 = arith.constant 0.000000e+00 : f32
    %32 = vector.broadcast %cst_17 : f32 to vector<8x32xf32>
    %33 = arith.maximumf %31, %32 : vector<8x32xf32>
    %c0_18 = arith.constant 0 : index
    %c0_19 = arith.constant 0 : index
    %34 = vector.load %arg4[%c0_18, %c0_19] : memref<32x32xf32, #tpu.memory_space<vmem>>, vector<32x32xf32>
    %cst_20 = arith.constant dense<0.000000e+00> : vector<8x32xf32>
    %35 = tpu.matmul %33, %34, %cst_20 {dimension_numbers = #tpu.dot_dimension_numbers<[1], [0], [0], [1], [0, 0, 1, 1], [], []>} : vector<8x32xf32>, vector<32x32xf32>, vector<8x32xf32> -> vector<8x32xf32>
    %36 = vector.broadcast %5 : vector<1x32xf32> to vector<8x32xf32>
    %37 = arith.addf %35, %36 : vector<8x32xf32>
    %cst_21 = arith.constant dense<0.000000e+00> : vector<8xf32>
    %38 = vector.multi_reduction <add>, %37, %cst_21 [1] : vector<8x32xf32> to vector<8xf32>
    %39 = vector.shape_cast %38 : vector<8xf32> to vector<8x1xf32>
    %cst_22 = arith.constant 3.200000e+01 : f32
    %40 = vector.broadcast %cst_22 : f32 to vector<8x1xf32>
    %41 = arith.divf %39, %40 : vector<8x1xf32>
    %42 = vector.broadcast %41 : vector<8x1xf32> to vector<8x32xf32>
    %43 = arith.subf %37, %42 : vector<8x32xf32>
    %44 = arith.mulf %43, %43 : vector<8x32xf32>
    %cst_23 = arith.constant dense<0.000000e+00> : vector<8xf32>
    %45 = vector.multi_reduction <add>, %44, %cst_23 [1] : vector<8x32xf32> to vector<8xf32>
    %46 = vector.shape_cast %45 : vector<8xf32> to vector<8x1xf32>
    %cst_24 = arith.constant 3.200000e+01 : f32
    %47 = vector.broadcast %cst_24 : f32 to vector<8x1xf32>
    %48 = arith.divf %46, %47 : vector<8x1xf32>
    %cst_25 = arith.constant 9.99999974E-6 : f32
    %49 = vector.broadcast %cst_25 : f32 to vector<8x1xf32>
    %50 = arith.addf %48, %49 : vector<8x1xf32>
    %51 = math.rsqrt %50 : vector<8x1xf32>
    %52 = vector.broadcast %51 : vector<8x1xf32> to vector<8x32xf32>
    %53 = arith.mulf %43, %52 : vector<8x32xf32>
    %54 = vector.broadcast %6 : vector<1x32xf32> to vector<8x32xf32>
    %55 = arith.mulf %53, %54 : vector<8x32xf32>
    %56 = vector.broadcast %7 : vector<1x32xf32> to vector<8x32xf32>
    %57 = arith.addf %55, %56 : vector<8x32xf32>
    %cst_26 = arith.constant 0.000000e+00 : f32
    %58 = vector.broadcast %cst_26 : f32 to vector<8x32xf32>
    %59 = arith.maximumf %57, %58 : vector<8x32xf32>
    %c0_27 = arith.constant 0 : index
    %c0_28 = arith.constant 0 : index
    %60 = vector.load %arg5[%c0_27, %c0_28] : memref<32x128xf32, #tpu.memory_space<vmem>>, vector<32x128xf32>
    %cst_29 = arith.constant dense<0.000000e+00> : vector<8x128xf32>
    %61 = tpu.matmul %59, %60, %cst_29 {dimension_numbers = #tpu.dot_dimension_numbers<[1], [0], [0], [1], [0, 0, 1, 1], [], []>} : vector<8x32xf32>, vector<32x128xf32>, vector<8x128xf32> -> vector<8x128xf32>
    %c0_30 = arith.constant 0 : index
    %c0_31 = arith.constant 0 : index
    %62 = vector.load %arg6[%c0_30, %c0_31] : memref<1x128xf32, #tpu.memory_space<vmem>>, vector<1x128xf32>
    %63 = vector.broadcast %62 : vector<1x128xf32> to vector<8x128xf32>
    %64 = arith.addf %61, %63 : vector<8x128xf32>
    %65 = math.tanh %64 : vector<8x128xf32>
    %66 = vector.broadcast %0 : f32 to vector<8x128xf32>
    %67 = arith.mulf %65, %66 : vector<8x128xf32>
    %c0_32 = arith.constant 0 : index
    %c0_33 = arith.constant 0 : index
    %68 = vector.load %arg8[%c0_32, %c0_33] : memref<8x128xf32, #tpu.memory_space<vmem>>, vector<8x128xf32>
    tpu.vector_store %arg8[%c0_32, %c0_33], %67 {strides = array<i32>} : memref<8x128xf32, #tpu.memory_space<vmem>>, vector<8x128xf32>,
    return
  }
  func.func @transform_0(%arg0: i32) -> (i32, i32) {
    %c0_i32 = arith.constant 0 : i32
    %c0_i32_0 = arith.constant 0 : i32
    %c0_i32_1 = arith.constant 0 : i32
    return %c0_i32, %c0_i32_0 : i32, i32
  }
  func.func @transform_1(%arg0: i32) -> (i32, i32) {
    %c0_i32 = arith.constant 0 : i32
    %c0_i32_0 = arith.constant 0 : i32
    return %arg0, %c0_i32 : i32, i32
  }
  func.func @transform_2(%arg0: i32) -> (i32, i32) {
    %c0_i32 = arith.constant 0 : i32
    %c0_i32_0 = arith.constant 0 : i32
    %c0_i32_1 = arith.constant 0 : i32
    return %c0_i32, %c0_i32_0 : i32, i32
  }
  func.func @transform_3(%arg0: i32) -> (i32, i32) {
    %c0_i32 = arith.constant 0 : i32
    %c0_i32_0 = arith.constant 0 : i32
    %c0_i32_1 = arith.constant 0 : i32
    return %c0_i32, %c0_i32_0 : i32, i32
  }
  func.func @transform_4(%arg0: i32) -> (i32, i32) {
    %c0_i32 = arith.constant 0 : i32
    %c0_i32_0 = arith.constant 0 : i32
    %c0_i32_1 = arith.constant 0 : i32
    return %c0_i32, %c0_i32_0 : i32, i32
  }
  func.func @transform_5(%arg0: i32) -> (i32, i32) {
    %c0_i32 = arith.constant 0 : i32
    %c0_i32_0 = arith.constant 0 : i32
    %c0_i32_1 = arith.constant 0 : i32
    return %c0_i32, %c0_i32_0 : i32, i32
  }
  func.func @transform_6(%arg0: i32) -> (i32, i32) {
    %c0_i32 = arith.constant 0 : i32
    %c0_i32_0 = arith.constant 0 : i32
    %c0_i32_1 = arith.constant 0 : i32
    return %c0_i32, %c0_i32_0 : i32, i32
  }
  func.func @transform_7(%arg0: i32) -> (i32, i32) {
    %c0_i32 = arith.constant 0 : i32
    %c0_i32_0 = arith.constant 0 : i32
    return %arg0, %c0_i32 : i32, i32
  }
}

</mosaic_0001>

<bundles_post_ra>
// kernel: tpu_custom_call.1
= control target key start
LH: loop header
LB: loop body
LE: loop exit
PB: predicated region body
PF: predicated region fallthrough
CT: control target
= control target key end

     0   :  { %13 = vsyncpa [#allocation4], 0  ;;  %s760_s0 = inlined_call_operand.<no memory space> [shape: f32[1,1], index: 0, kind: input, shape index: {}]   ;;  %s761_s1 = inlined_call_operand.hbm [shape: f32[8,16], index: 1, kind: input, shape index: {}]   ;;  %s762_s2 = inlined_call_operand.hbm [shape: f32[16,32], index: 2, kind: input, shape index: {}]   ;;  %s763_s3 = inlined_call_operand.hbm [shape: f32[32,32], index: 3, kind: input, shape index: {}]   ;;  %s764_s4 = inlined_call_operand.hbm [shape: f32[32,128], index: 4, kind: input, shape index: {}]   ;;  %s765_s5 = inlined_call_operand.vmem [shape: f32[1,128], index: 5, kind: input, shape index: {}]   ;;  %s766_s6 = inlined_call_operand.vmem [shape: f32[8,32], index: 6, kind: input, shape index: {}]   ;;  %s767_s7 = inlined_call_operand.hbm [shape: f32[8,128], index: 7, kind: output, shape index: {}]  }
   0x1   :  { %14 = vsyncpa [#allocation7], 0 }
   0x2   :  { %15 = vsyncpa [#allocation10], 0 }
   0x3   :  { %16 = vsyncpa [#allocation5], 0  ;;  %s606_s24 = smov [#allocation6]   ;;  %s488_s28 = scalar_lea.hbm %s762_s2, 256 }
   0x4   :  { %s34_s25 = sshll.u32 %s606_s24, 4  ;;  %p489_p0 = scmp.ne.s32.totalorder %s762_s2, %s488_s28  ;;  %s35_s25 = int_to_ptr.vmem [resolvable:$true] %s34_s25 }
   0x5   :  { %p492_p1 = scmp.lt.u32.totalorder %s488_s28, %s762_s2 }
   0x7   :  { %p494_p2 = pnand %p492_p1, %p489_p0 }
   0x9   :  { %497 = shalt.err (!%p494_p2)
}
   0xa   :  { %s498_s10 = scalar_lea.vmem %s35_s25, 256  ;;  %p503_p4 = scmp.lt.s32.totalorder %s35_s25, %s35_s25 }
   0xb   :  { %p499_p3 = scmp.ne.s32.totalorder %s35_s25, %s498_s10  ;;  %p504_p5 = scmp.lt.s32.totalorder %s498_s10, %s498_s10 }
   0xd   :  { %p505_p6 = por %p504_p5, %p503_p4 }
   0xf   :  { %p506_p7 = pnand %p505_p6, %p499_p3 }
  0x11   :  { %509 = shalt.err (!%p506_p7)
}
  0x12   :  { %s607_s11 = smov 128   ;;  %s608_s12 = smov 8  }
  0x13   :  { %40 = dma.hbm_to_vmem [thread:$0]  %s762_s2, 256, %s35_s25, [#allocation7], %s607_s11, %s607_s11, %s608_s12  }
  0x14   :  { %s609_s15 = smov [#allocation3]   ;;  %s610_s17 = smov [#allocation8]  }
  0x15   :  { %s25_s16 = sshll.u32 %s609_s15, 4  ;;  %s46_s18 = sshll.u32 %s610_s17, 4  ;;  %s26_s16 = int_to_ptr.vmem [resolvable:$true] %s25_s16  ;;  %s47_s18 = int_to_ptr.vmem [resolvable:$true] %s46_s18 }
  0x16   :  { %s510_s21 = scalar_lea.hbm %s761_s1, 128 }
  0x17   :  { %p511_p8 = scmp.ne.s32.totalorder %s761_s1, %s510_s21  ;;  %p514_p9 = scmp.lt.u32.totalorder %s510_s21, %s761_s1 }
  0x19   :  { %p516_p10 = pnand %p514_p9, %p511_p8 }
  0x1b   :  { %519 = shalt.err (!%p516_p10)
}
  0x1c   :  { %s520_s2 = scalar_lea.vmem %s26_s16, 128  ;;  %p525_p12 = scmp.lt.s32.totalorder %s26_s16, %s26_s16 }
  0x1d   :  { %p521_p11 = scmp.ne.s32.totalorder %s26_s16, %s520_s2  ;;  %p526_p13 = scmp.lt.s32.totalorder %s520_s2, %s520_s2 }
  0x1f   :  { %p527_p0 = por %p526_p13, %p525_p12 }
  0x21   :  { %p528_p1 = pnand %p527_p0, %p521_p11 }
  0x23   :  { %531 = shalt.err (!%p528_p1)
}
  0x24   :  { %28 = dma.hbm_to_vmem [thread:$0]  %s761_s1, 128, %s26_s16, [#allocation4]  }
  0x25   :  { %s532_s30 = scalar_lea.hbm %s763_s3, 512 }
  0x26   :  { %p533_p2 = scmp.ne.s32.totalorder %s763_s3, %s532_s30  ;;  %p536_p3 = scmp.lt.u32.totalorder %s532_s30, %s763_s3 }
  0x28   :  { %p538_p4 = pnand %p536_p3, %p533_p2 }
  0x2a   :  { %541 = shalt.err (!%p538_p4)
}
  0x2b   :  { %s542_s14 = scalar_lea.vmem %s47_s18, 512  ;;  %p547_p6 = scmp.lt.s32.totalorder %s47_s18, %s47_s18 }
  0x2c   :  { %p543_p5 = scmp.ne.s32.totalorder %s47_s18, %s542_s14  ;;  %p548_p7 = scmp.lt.s32.totalorder %s542_s14, %s542_s14 }
  0x2e   :  { %p549_p8 = por %p548_p7, %p547_p6 }
  0x30   :  { %p550_p9 = pnand %p549_p8, %p543_p5 }
  0x32   :  { %553 = shalt.err (!%p550_p9)
}
  0x33   :  { %52 = dma.hbm_to_vmem [thread:$0]  %s763_s3, 512, %s47_s18, [#allocation7], %s607_s11, %s607_s11, %s608_s12  }
  0x34   :  { %s611_s16 = smov [#allocation9]   ;;  %s554_s21 = scalar_lea.hbm %s764_s4, 512 }
  0x35   :  { %s58_s17 = sshll.u32 %s611_s16, 4  ;;  %p555_p10 = scmp.ne.s32.totalorder %s764_s4, %s554_s21  ;;  %s59_s17 = int_to_ptr.vmem [resolvable:$true] %s58_s17 }
  0x36   :  { %p558_p11 = scmp.lt.u32.totalorder %s554_s21, %s764_s4 }
  0x38   :  { %p560_p12 = pnand %p558_p11, %p555_p10 }
  0x3a   :  { %563 = shalt.err (!%p560_p12)
}
  0x3b   :  { %s564_s2 = scalar_lea.vmem %s59_s17, 512  ;;  %p569_p0 = scmp.lt.s32.totalorder %s59_s17, %s59_s17 }
  0x3c   :  { %p565_p13 = scmp.ne.s32.totalorder %s59_s17, %s564_s2  ;;  %p570_p1 = scmp.lt.s32.totalorder %s564_s2, %s564_s2 }
  0x3e   :  { %p571_p2 = por %p570_p1, %p569_p0 }
  0x40   :  { %p572_p3 = pnand %p571_p2, %p565_p13 }
  0x42   :  { %575 = shalt.err (!%p572_p3)
}
  0x43   :  { %64 = dma.hbm_to_vmem [thread:$0]  %s764_s4, 512, %s59_s17, [#allocation10], %s607_s11, %s607_s11, %s608_s12  }
  0x44   :  { %598 = dma.done.wait [#allocation4], 128  }
  0x45   :  { %599 = vsyncadd [#allocation4], 4294967168 }
  0x46   :  { %600 = dma.done.wait [#allocation7], 768  }
  0x47   :  { %601 = vsyncadd [#allocation7], 4294966528 }
  0x48   :  { %602 = dma.done.wait [#allocation10], 512  }
  0x49   :  { %603 = vsyncadd [#allocation10], 4294966784  ;;  %v612_v0 = vmov 0.0|0.0   ;;  %vm613_vm0 = vmmov 0   ;;  %v614_v1 = vmov 0.0   ;;  %v89_v2 = vld [vmem:[#allocation6] sm:$0xff]  ;;  %v385_v62 = vstv %s760_s0 }
  0x4a   :  { %457 = vmatprep.subr.bf16.mxu0 %v612_v0  ;;  %432 = vmatprep.mubr.msk.f32.mxu0 %vm613_vm0, %v614_v1  ;;  %v90_v3 = vld [vmem:[#allocation6 + $0x8] sm:$0xff]  ;;  %v82_v5 = vld [vmem:[#allocation3] sm:$0xff]  ;;  %vm95_vm1 = vcmask 130048   ;;  %vm169_vm2 = vcmask 261120   ;;  %v195_v16 = vld [vmem:[#allocation8] sm:$0xff]  ;;  %s615_s17 = smov [#allocation11]  }
  0x4b   :  { %460 = vmatprep.subr.bf16.mxu1 %v612_v0  ;;  %443 = vmatprep.mubr.msk.f32.mxu1 %vm613_vm0, %v614_v1  ;;  %v458_v4 = vpack.c.bf16 %v90_v3, %v89_v2  ;;  %v405_v6 = vld [vmem:[%s766_s6] ss:$0 sm:$0xff]  ;;  %v197_v19 = vld [vmem:[#allocation8 + $0x10] sm:$0xff]  ;;  %v198_v20 = vld [vmem:[#allocation8 + $0x18] sm:$0xff]  ;;  %s394_s19 = sshll.u32 %s615_s17, 4  ;;  %s395_s19 = int_to_ptr.vmem [resolvable:$true] %s394_s19 }
  0x4c   :  { %v196_v17 = vld [vmem:[#allocation8 + $0x8] sm:$0xff]  ;;  %v464_v21 = vpack.c.bf16 %v198_v20, %v197_v19  ;;  %v300_v42 = vld [vmem:[#allocation9] sm:$0xff]  ;;  %v302_v45 = vld [vmem:[#allocation9 + $0x10] sm:$0xff]  ;;  %p581_p5 = scmp.lt.s32.totalorder %s395_s19, %s395_s19 }
  0x4d   :  { %459 = vmatpush3.bf16.msra.mxu0 %v458_v4  ;;  %v461_v18 = vpack.c.bf16 %v196_v17, %v195_v16  ;;  %v407_v26 = vld [vmem:[%s766_s6 + $0x1] ss:$0 sm:$0xff]  ;;  %v408_v28 = vld [vmem:[%s766_s6 + $0x2] ss:$0 sm:$0xff]  ;;  %v409_v32 = vld [vmem:[%s766_s6 + $0x3] ss:$0 sm:$0xff] }
  0x4e   :  { %466 = vmatprep.subr.bf16.mxu0 %v612_v0  ;;  %v301_v43 = vld [vmem:[#allocation9 + $0x8] sm:$0xff]  ;;  %v303_v46 = vld [vmem:[#allocation9 + $0x18] sm:$0xff] }
  0x4f   :  { %462 = vmatpush3.bf16.msra.mxu1 %v461_v18  ;;  %v467_v44 = vpack.c.bf16 %v301_v43, %v300_v42  ;;  %v470_v47 = vpack.c.bf16 %v303_v46, %v302_v45  ;;  %v411_v52 = vld [vmem:[%s766_s6 + $0x4] ss:$0 sm:$0xff]  ;;  %v412_v54 = vld [vmem:[%s766_s6 + $0x5] ss:$0 sm:$0xff]  ;;  %v413_v58 = vld [vmem:[%s765_s5] ss:$0 sm:$0xff] }
  0x50   :  { %433 = vmatmul.mubr.msk.f32.vlgmr.msra.gmra.mrb[0].mxu0 %vm95_vm1, %v82_v5  ;;  %463 = vmatprep.subr.bf16.mxu1 %v612_v0  ;;  %s576_s6 = scalar_lea.vmem %s395_s19, 128 }
  0x51   :  { %454 = vmatprep.mubr.msk.f32.mxu0 %vm613_vm0, %v614_v1  ;;  %468 = vmatpush3.bf16.msra.mxu0 %v467_v44  ;;  %p577_p4 = scmp.ne.s32.totalorder %s395_s19, %s576_s6  ;;  %p582_p6 = scmp.lt.s32.totalorder %s576_s6, %s576_s6 }
  0x52   :  { %469 = vmatprep.subr.bf16.mxu0 %v612_v0 }
  0x53   :  { %465 = vmatpush3.bf16.msra.mxu1 %v464_v21  ;;  %p583_p7 = por %p582_p6, %p581_p5 }
  0x55   :  { %471 = vmatpush3.bf16.msra.mxu0 %v470_v47  ;;  %p584_p8 = pnand %p583_p7, %p577_p4 }
 0x123   :  { %v165_v7 = vpop.f32.mrb[0].mxu0 }
 0x124   :  { %v166_v8 = vadd.f32 %v405_v6, %v165_v7  ;;  %v434_v9 = vpop.f32.mrb[1].mxu0 }
 0x126   :  { %v170_v10 = vsel %vm169_vm2, %v166_v8, 0.0 }
 0x127   :  { %171 = vadd.xlane.f32.xlu0 %v170_v10 }
 0x1b4   :  { %v172_v11 = vpop.xlane.xlu0 %171 }
 0x1b5   :  { %v174_v12 = vmul.f32 0.03125, %v172_v11 }
 0x1b7   :  { %v175_v13 = vsub.f32 %v166_v8, %v174_v12 }
 0x1b9   :  { %v176_v14 = vmul.f32 %v175_v13, %v175_v13 }
 0x1bb   :  { %v177_v15 = vsel %vm169_vm2, %v176_v14, 0.0 }
 0x1bc   :  { %178 = vadd.xlane.f32.xlu0 %v177_v15 }
 0x249   :  { %v179_v22 = vpop.xlane.xlu0 %178 }
 0x24a   :  { %v180_v23 = vmul.f32 0.03125, %v179_v22 }
 0x24c   :  { %v181_v24 = vadd.f32 1e-05, %v180_v23 }
 0x24e   :  { %482 = vrsqrt.f32 %v181_v24 }
 0x258   :  { %v483_v25 = vpop.eup %482 }
 0x259   :  { %v183_v27 = vmul.f32 %v483_v25, %v175_v13 }
 0x25b   :  { %v188_v29 = vmul.f32 %v407_v26, %v183_v27 }
 0x25d   :  { %v193_v30 = vadd.f32 %v408_v28, %v188_v29 }
 0x25f   :  { %v194_v31 = vmax.f32 %v193_v30, 0.0 }
 0x261   :  { %444 = vmatmul.mubr.msk.f32.vlgmr.msra.gmra.mrb[0].mxu1 %vm169_vm2, %v194_v31 }
 0x334   :  { %v272_v33 = vpop.f32.mrb[0].mxu1 }
 0x335   :  { %v273_v34 = vadd.f32 %v409_v32, %v272_v33  ;;  %v445_v35 = vpop.f32.mrb[1].mxu1 }
 0x337   :  { %v276_v36 = vsel %vm169_vm2, %v273_v34, 0.0 }
 0x338   :  { %277 = vadd.xlane.f32.xlu1 %v276_v36 }
 0x3c5   :  { %v278_v37 = vpop.xlane.xlu1 %277 }
 0x3c6   :  { %v279_v38 = vmul.f32 0.03125, %v278_v37 }
 0x3c8   :  { %v280_v39 = vsub.f32 %v273_v34, %v279_v38 }
 0x3ca   :  { %v281_v40 = vmul.f32 %v280_v39, %v280_v39 }
 0x3cc   :  { %v282_v41 = vsel %vm169_vm2, %v281_v40, 0.0 }
 0x3cd   :  { %283 = vadd.xlane.f32.xlu1 %v282_v41 }
 0x45a   :  { %v284_v48 = vpop.xlane.xlu1 %283 }
 0x45b   :  { %v285_v49 = vmul.f32 0.03125, %v284_v48 }
 0x45d   :  { %v286_v50 = vadd.f32 1e-05, %v285_v49 }
 0x45f   :  { %484 = vrsqrt.f32 %v286_v50 }
 0x469   :  { %v485_v51 = vpop.eup %484 }
 0x46a   :  { %v288_v53 = vmul.f32 %v485_v51, %v280_v39 }
 0x46c   :  { %v293_v55 = vmul.f32 %v411_v52, %v288_v53 }
 0x46e   :  { %v298_v56 = vadd.f32 %v412_v54, %v293_v55 }
 0x470   :  { %v299_v57 = vmax.f32 %v298_v56, 0.0 }
 0x472   :  { %455 = vmatmul.mubr.msk.f32.vlgmr.msra.gmra.mrb[2].mxu0 %vm169_vm2, %v299_v57 }
 0x545   :  { %v380_v59 = vpop.f32.mrb[2].mxu0 }
 0x546   :  { %v381_v60 = vadd.f32 %v413_v58, %v380_v59  ;;  %v456_v61 = vpop.f32.mrb[3].mxu0 }
 0x548   :  { %486 = vtanh.f32 %v381_v60 }
 0x552   :  { %v487_v63 = vpop.eup %486 }
 0x553   :  { %v386_v0 = vmul.f32 %v487_v63, %v385_v62 }
 0x555   :  { %387 = vst [vmem:[#allocation11] sm:$0xff] %v386_v0 }
 0x556   :  { %587 = shalt.err (!%p584_p8)
}
 0x557   :  { %s588_s21 = scalar_lea.hbm %s767_s7, 128 }
 0x558   :  { %p589_p9 = scmp.ne.s32.totalorder %s767_s7, %s588_s21  ;;  %p592_p10 = scmp.lt.u32.totalorder %s588_s21, %s767_s7 }
 0x55a   :  { %p594_p11 = pnand %p592_p10, %p589_p9 }
 0x55c   :  { %597 = shalt.err (!%p594_p11)
}
 0x55d   :  { %397 = dma.vmem_to_hbm [thread:$0]  %s395_s19, 128, %s767_s7, [#allocation5]  }
 0x55e   :  { %604 = dma.done.wait [#allocation5], 128  }
 0x55f   :  { %605 = vsyncadd [#allocation5], 4294967168 }
 0x560   :  { %401 = vsyncpa [#allocation4], 1 }
 0x561   :  { %402 = vsyncpa [#allocation7], 1 }
 0x562   :  { %403 = vsyncpa [#allocation10], 1 }
 0x563   :  { %404 = vsyncpa [#allocation5], 1 }

</bundles_post_ra>
